<compile_context>
chip_gen: v5e
topology: v5e:2x2
jax: 0.10.0
libtpu: 0.0.40
codegen_flags: <defaults>
</compile_context>

<pallas_src>
import jax
import jax.numpy as jnp
from jax.experimental import pallas as pl
from jax.experimental.pallas import tpu as pltpu


EPS = 1e-10
_TARGET_BLOCK_BYTES = 2 * 1024 * 1024   # ~2 MiB per I/O block (v7x-safe)
_VMEM_LIMIT_BYTES = 32 * 1024 * 1024    # safe on v5e / v6e / v7x
_MIN_GRID_STEPS = 8                     # enough steps for DMA overlap + megacore


def _l2norm_kernel(x_ref, w_ref, o_ref):
    # x_ref / o_ref: (TB_N, C, T_HW) tile; w_ref: (C, 1) per-channel scale (f32).
    ss = jnp.sum(jnp.square(x_ref[...].astype(jnp.float32)),
                 axis=-2, keepdims=True)                 # (TB_N, 1, T_HW) sublane reduce
    norm = jnp.sqrt(ss) + EPS                            # matches torch: sqrt(.) + eps
    inv = pl.reciprocal(norm, approx=False)              # exact; only 1/C of elements
    w = w_ref[...]                                       # (C, 1) -> broadcast over lanes
    o_ref[...] = (x_ref[...].astype(jnp.float32) * inv * w).astype(o_ref.dtype)


def _round_up(a, m):
    return (a + m - 1) // m * m


def _choose_tiles(n, c, hw, itemsize):
    """Pick (TB_N, T_HW) giving >= _MIN_GRID_STEPS blocks (when possible),
    ~_TARGET_BLOCK_BYTES per block, lane-dense (128-multiple) HW tiles and a
    balanced tail."""
    plane_bytes = c * hw * itemsize
    total_bytes = n * plane_bytes
    want_blocks = max(_MIN_GRID_STEPS, pl.cdiv(total_bytes, _TARGET_BLOCK_BYTES))

    # HW tiles must be a multiple of 128 (lane dim) unless they span all of HW.
    max_hw_blocks = max(1, hw // 128)
    # Prefer splitting HW (keeps channels whole in sublanes, lanes dense).
    gj = min(max_hw_blocks, want_blocks)
    if gj <= 1:
        t_hw = hw
    else:
        t_hw = min(hw, _round_up(pl.cdiv(hw, gj), 128))
    gj = pl.cdiv(hw, t_hw)

    # Pick up any remaining split factor along the batch axis.
    gn = min(n, pl.cdiv(want_blocks, gj))
    tb_n = pl.cdiv(n, gn)
    return tb_n, t_hw


def l2norm_pallas(x_nchw, weight):
    """x_nchw: (N, C, H, W); weight: (C,). Returns (N, C, H, W)."""
    N, C, H, W = x_nchw.shape
    HW = H * W
    # NCHW -> (N, C, H*W): trailing-dim collapse only, no data movement.
    x3 = x_nchw.reshape(N, C, HW)
    w2d = weight.reshape(C, 1).astype(jnp.float32)       # pre-cast once in wrapper

    tb_n, t_hw = _choose_tiles(N, C, HW, x_nchw.dtype.itemsize)
    grid = (pl.cdiv(N, tb_n), pl.cdiv(HW, t_hw))

    out3 = pl.pallas_call(
        _l2norm_kernel,
        out_shape=jax.ShapeDtypeStruct((N, C, HW), x_nchw.dtype),
        grid_spec=pltpu.PrefetchScalarGridSpec(
            num_scalar_prefetch=0,
            grid=grid,
            in_specs=[
                pl.BlockSpec((tb_n, C, t_hw), lambda i, j: (i, 0, j)),
                pl.BlockSpec((C, 1), lambda i, j: (0, 0)),   # VMEM-resident weight
            ],
            out_specs=pl.BlockSpec((tb_n, C, t_hw), lambda i, j: (i, 0, j)),
        ),
        compiler_params=pltpu.CompilerParams(
            dimension_semantics=("parallel", "parallel"),
            vmem_limit_bytes=_VMEM_LIMIT_BYTES,
        ),
    )(x3, w2d)

    return out3.reshape(N, C, H, W)


def l2norm_ref(x_nchw, weight):
    """Pure-JAX reference mirroring the PyTorch forward."""
    norm = jnp.sqrt(jnp.sum(x_nchw ** 2, axis=1, keepdims=True)) + EPS
    xn = x_nchw / norm
    w = weight.reshape(1, -1, 1, 1)
    return w * xn


def _check(shape, key, scale=20.0, atol=1e-4, rtol=1e-4):
    N, C, H, W = shape
    x = jax.random.normal(key, shape, dtype=jnp.float32)
    # reset_parameters: init.constant_(weight, scale)
    weight = jnp.full((C,), scale, dtype=jnp.float32)
    out = jax.block_until_ready(l2norm_pallas(x, weight))
    ref = l2norm_ref(x, weight)
    assert out.shape == shape
    assert jnp.allclose(out, ref, atol=atol, rtol=rtol), float(jnp.max(jnp.abs(out - ref)))


if __name__ == "__main__":
    key = jax.random.PRNGKey(0)
    k0, k1, k2 = jax.random.split(key, 3)
    # Small shape consistent with the module (input_channels=512, tiny plane).
    _check((2, 512, 8, 8), k0)
    # Real SSD L2Norm shape: conv4_3 feature map, 38x38 spatial (ragged HW tail).
    _check((1, 512, 38, 38), k1)
    # Multi-block batch + spatial axes.
    _check((2, 512, 48, 48), k2)
    print("KERNEL_OK")
</pallas_src>

<mosaic_0001>
module attributes {stable_mosaic.version = 11 : i64} {
  func.func @_l2norm_kernel(%arg0: i32, %arg1: i32, %arg2: memref<1x512x64xf32, #tpu.memory_space<vmem>>, %arg3: memref<512x1xf32, #tpu.memory_space<vmem>>, %arg4: memref<1x512x64xf32, #tpu.memory_space<vmem>>) attributes {dimension_semantics = [#tpu.dimension_semantics<parallel>, #tpu.dimension_semantics<parallel>], iteration_bounds = array<i64: 2, 1>, scalar_prefetch = 0 : i64, scratch_operands = 0 : i64, tpu.core_type = #tpu.core_type<tc>, window_params = [{transform_indices = @transform_0, window_bounds = array<i64: 1, 512, 64>}, {pipeline_mode = #tpu.pipeline_mode<synchronous>, transform_indices = @transform_1, window_bounds = array<i64: 512, 1>}, {transform_indices = @transform_2, window_bounds = array<i64: 1, 512, 64>}]} {
    %c0 = arith.constant 0 : index
    %c0_0 = arith.constant 0 : index
    %c0_1 = arith.constant 0 : index
    %0 = vector.load %arg2[%c0, %c0_0, %c0_1] : memref<1x512x64xf32, #tpu.memory_space<vmem>>, vector<1x512x64xf32>
    %1 = arith.mulf %0, %0 : vector<1x512x64xf32>
    %cst = arith.constant dense<0.000000e+00> : vector<1x64xf32>
    %2 = vector.multi_reduction <add>, %1, %cst [1] : vector<1x512x64xf32> to vector<1x64xf32>
    %3 = vector.shape_cast %2 : vector<1x64xf32> to vector<1x1x64xf32>
    %4 = math.sqrt %3 : vector<1x1x64xf32>
    %cst_2 = arith.constant 1.000000e-10 : f32
    %5 = vector.broadcast %cst_2 : f32 to vector<1x1x64xf32>
    %6 = arith.addf %4, %5 : vector<1x1x64xf32>
    %7 = tpu.reciprocal %6 : vector<1x1x64xf32> -> vector<1x1x64xf32>
    %c0_3 = arith.constant 0 : index
    %c0_4 = arith.constant 0 : index
    %8 = vector.load %arg3[%c0_3, %c0_4] : memref<512x1xf32, #tpu.memory_space<vmem>>, vector<512x1xf32>
    %c0_5 = arith.constant 0 : index
    %c0_6 = arith.constant 0 : index
    %c0_7 = arith.constant 0 : index
    %9 = vector.load %arg2[%c0_5, %c0_6, %c0_7] : memref<1x512x64xf32, #tpu.memory_space<vmem>>, vector<1x512x64xf32>
    %10 = vector.broadcast %7 : vector<1x1x64xf32> to vector<1x512x64xf32>
    %11 = arith.mulf %9, %10 : vector<1x512x64xf32>
    %12 = vector.shape_cast %8 : vector<512x1xf32> to vector<1x512x1xf32>
    %13 = vector.broadcast %12 : vector<1x512x1xf32> to vector<1x512x64xf32>
    %14 = arith.mulf %11, %13 : vector<1x512x64xf32>
    %c0_8 = arith.constant 0 : index
    %c0_9 = arith.constant 0 : index
    %c0_10 = arith.constant 0 : index
    %15 = vector.load %arg4[%c0_8, %c0_9, %c0_10] : memref<1x512x64xf32, #tpu.memory_space<vmem>>, vector<1x512x64xf32>
    tpu.vector_store %arg4[%c0_8, %c0_9, %c0_10], %14 {strides = array<i32>} : memref<1x512x64xf32, #tpu.memory_space<vmem>>, vector<1x512x64xf32>,
    return
  }
  func.func @transform_0(%arg0: i32, %arg1: i32) -> (i32, i32, i32) {
    %c0_i32 = arith.constant 0 : i32
    %c0_i32_0 = arith.constant 0 : i32
    return %arg0, %c0_i32, %arg1 : i32, i32, i32
  }
  func.func @transform_1(%arg0: i32, %arg1: i32) -> (i32, i32) {
    %c0_i32 = arith.constant 0 : i32
    %c0_i32_0 = arith.constant 0 : i32
    %c0_i32_1 = arith.constant 0 : i32
    return %c0_i32, %c0_i32_0 : i32, i32
  }
  func.func @transform_2(%arg0: i32, %arg1: i32) -> (i32, i32, i32) {
    %c0_i32 = arith.constant 0 : i32
    %c0_i32_0 = arith.constant 0 : i32
    return %arg0, %c0_i32, %arg1 : i32, i32, i32
  }
}

</mosaic_0001>

<bundles_post_ra>
// kernel: tpu_custom_call.1
= control target key start
LH: loop header
LB: loop body
LE: loop exit
PB: predicated region body
PF: predicated region fallthrough
CT: control target
= control target key end

     0   :  { %s1208_s9 = smov 0   ;;  %s1210_s10 = smov 0   ;;  %s2203_s0 = inlined_call_operand.vmem [shape: f32[2,512,64], index: 0, kind: input, shape index: {}]   ;;  %s2204_s1 = inlined_call_operand.vmem [shape: f32[512,1], index: 1, kind: input, shape index: {}]   ;;  %s2205_s2 = inlined_call_operand.vmem [shape: f32[2,512,64], index: 2, kind: output, shape index: {}]  }
   0x1   :  { %s1212_s11 = smov 0  }
   0x2 LB: > { %s24_s12 = sadd.s32 1, %s1186_s10  ;;  %p1127_p0 = scmp.ge.s32.totalorder %s1190_s11, 1  ;;  %s1190_s11 = sphi %s1212_s11, %s12_s11   ;;  %s1186_s10 = sphi %s1210_s10, %s2331_s10   ;;  %s1182_s9 = sphi %s1208_s9, %s2330_s9  }
   0x3   : > { %p26_p1 = scmp.ge.s32.totalorder %s24_s12, 2  ;;  %p131_p2 = scmp.lt.s32.totalorder %s1190_s11, 3 }
   0x5   : > { %s2333_s12 = smov (%p26_p1, %s24_s12), 0  ;;  %p132_p3 = pnand %p1127_p0, %p131_p2 }
   0x7   : > { %135 = sbr.rel (%p132_p3) target bundleno = 301 (0x12d), region = 28 }
   0xc   : > { %v468_v0 = vld [vmem:[%s2204_s1 + $0x20] sm:$0xff]  ;;  %v466_v1 = vld [vmem:[%s2204_s1 + $0x10] sm:$0xff]  ;;  %p159_p4 = scmp.lt.s32.totalorder %s1182_s9, 1  ;;  %v1192_v3 = vmov 0   ;;  %vm303_vm0 = vcmask 523264   ;;  %v469_v7 = vld [vmem:[%s2204_s1 + $0x28] sm:$0xff] }
   0xd   : > { %v464_v2 = vld [vmem:[%s2204_s1] sm:$0xff]  ;;  %1163 = vset.pattern.permute.xlu2 %v1192_v3  ;;  %1162 = vset.pattern.permute.xlu1 %v1192_v3  ;;  %v467_v13 = vld [vmem:[%s2204_s1 + $0x18] sm:$0xff]  ;;  %v465_v14 = vld [vmem:[%s2204_s1 + $0x8] sm:$0xff] }
   0xe   : > { %1161 = vset.pattern.permute.xlu0 %v1192_v3  ;;  %614 = vperm.xlu2 %1163, %v468_v0   ;;  %s2335_s9 = smov (!%p159_p4, %s1182_s9), 1  ;;  %v472_v29 = vld [vmem:[%s2204_s1 + $0x40] sm:$0xff]  ;;  %v471_v32 = vld [vmem:[%s2204_s1 + $0x38] sm:$0xff]  ;;  %v470_v33 = vld [vmem:[%s2204_s1 + $0x30] sm:$0xff] }
   0xf   : > { %604 = vperm.xlu1 %1162, %v466_v1   ;;  %594 = vperm.xlu0 %1161, %v464_v2   ;;  %s1134_s19 = sshll.u32 %s2335_s9, 9  ;;  %v475_v48 = vld [vmem:[%s2204_s1 + $0x58] sm:$0xff]  ;;  %v474_v51 = vld [vmem:[%s2204_s1 + $0x50] sm:$0xff]  ;;  %v473_v52 = vld [vmem:[%s2204_s1 + $0x48] sm:$0xff] }
  0x10   : > { %s1243_s22 = scalar_lea.vmem %s2203_s0, %s1134_s19  ;;  %v478_v3 = vld [vmem:[%s2204_s1 + $0x70] sm:$0xff]  ;;  %s1893_s7 = scalar_lea.vmem %s2205_s2, %s1134_s19 }
  0x11   : > { %v1246_v4 = vld [vmem:[%s1243_s22] sm:$0xff]  ;;  %v1249_v5 = vld [vmem:[%s1243_s22 + $0x8] sm:$0xff]  ;;  %v1252_v6 = vld [vmem:[%s1243_s22 + $0x10] sm:$0xff] }
  0x12   : > { %v1258_v8 = vld [vmem:[%s1243_s22 + $0x18] sm:$0xff]  ;;  %v1261_v9 = vld [vmem:[%s1243_s22 + $0x20] sm:$0xff]  ;;  %v239_v10 = vmul.f32 %v1246_v4, %v1246_v4  ;;  %v240_v11 = vmul.f32 %v1249_v5, %v1249_v5  ;;  %v241_v12 = vmul.f32 %v1252_v6, %v1252_v6  ;;  %v1278_v16 = vld [vmem:[%s1243_s22 + $0x28] sm:$0xff] }
  0x13   : > { %v242_v15 = vmul.f32 %v1258_v8, %v1258_v8  ;;  %v243_v18 = vmul.f32 %v1261_v9, %v1261_v9  ;;  %v1285_v20 = vld [vmem:[%s1243_s22 + $0x30] sm:$0xff]  ;;  %v244_v23 = vmul.f32 %v1278_v16, %v1278_v16  ;;  %v1292_v25 = vld [vmem:[%s1243_s22 + $0x38] sm:$0xff]  ;;  %v1301_v30 = vld [vmem:[%s1243_s22 + $0x40] sm:$0xff] }
  0x14   : > { %v304_v17 = vsel %vm303_vm0, %v239_v10, 0.0  ;;  %v305_v19 = vsel %vm303_vm0, %v240_v11, 0.0  ;;  %v307_v22 = vsel %vm303_vm0, %v241_v12, 0.0  ;;  %v245_v27 = vmul.f32 %v1285_v20, %v1285_v20  ;;  %v1313_v36 = vld [vmem:[%s1243_s22 + $0x48] sm:$0xff]  ;;  %v1319_v40 = vld [vmem:[%s1243_s22 + $0x50] sm:$0xff]  ;;  %v1325_v44 = vld [vmem:[%s1243_s22 + $0x58] sm:$0xff] }
  0x15   : > { %v306_v21 = vadd.f32 %v305_v19, %v304_v17  ;;  %v309_v24 = vsel %vm303_vm0, %v242_v15, 0.0  ;;  %v311_v28 = vsel %vm303_vm0, %v243_v18, 0.0  ;;  %v246_v34 = vmul.f32 %v1292_v25, %v1292_v25  ;;  %v1334_v49 = vld [vmem:[%s1243_s22 + $0x60] sm:$0xff]  ;;  %v1346_v55 = vld [vmem:[%s1243_s22 + $0x68] sm:$0xff]  ;;  %v1352_v59 = vld [vmem:[%s1243_s22 + $0x70] sm:$0xff] }
  0x16   : > { %619 = vperm.xlu2 %1163, %v469_v7   ;;  %v313_v35 = vsel %vm303_vm0, %v244_v23, 0.0  ;;  %v247_v38 = vmul.f32 %v1301_v30, %v1301_v30  ;;  %v315_v39 = vsel %vm303_vm0, %v245_v27, 0.0  ;;  %v248_v42 = vmul.f32 %v1313_v36, %v1313_v36  ;;  %v1358_v63 = vld [vmem:[%s1243_s22 + $0x78] sm:$0xff]  ;;  %v1367_v7 = vld [vmem:[%s1243_s22 + $0x80] sm:$0xff]  ;;  %v477_v11 = vld [vmem:[%s2204_s1 + $0x68] sm:$0xff] }
  0x17   : > { %609 = vperm.xlu1 %1162, %v467_v13   ;;  %599 = vperm.xlu0 %1161, %v465_v14   ;;  %v308_v26 = vadd.f32 %v307_v22, %v306_v21  ;;  %v317_v43 = vsel %vm303_vm0, %v246_v34, 0.0  ;;  %v249_v46 = vmul.f32 %v1319_v40, %v1319_v40  ;;  %v250_v53 = vmul.f32 %v1325_v44, %v1325_v44  ;;  %v476_v12 = vld [vmem:[%s2204_s1 + $0x60] sm:$0xff]  ;;  %v1379_v15 = vld [vmem:[%s1243_s22 + $0x88] sm:$0xff]  ;;  %v1385_v21 = vld [vmem:[%s1243_s22 + $0x90] sm:$0xff] }
  0x18   : > { %v319_v47 = vsel %vm303_vm0, %v247_v38, 0.0  ;;  %v321_v54 = vsel %vm303_vm0, %v248_v42, 0.0  ;;  %v251_v57 = vmul.f32 %v1334_v49, %v1334_v49  ;;  %v252_v61 = vmul.f32 %v1346_v55, %v1346_v55  ;;  %v480_v34 = vld [vmem:[%s2204_s1 + $0x80] sm:$0xff] }
  0x19   : > { %v310_v31 = vadd.f32 %v309_v24, %v308_v26  ;;  %v323_v58 = vsel %vm303_vm0, %v249_v46, 0.0  ;;  %v325_v62 = vsel %vm303_vm0, %v250_v53, 0.0  ;;  %v253_v1 = vmul.f32 %v1352_v59, %v1352_v59  ;;  %v1391_v26 = vld [vmem:[%s1243_s22 + $0x98] sm:$0xff] }
  0x1a   : > { %v327_v2 = vsel %vm303_vm0, %v251_v57, 0.0  ;;  %v254_v13 = vmul.f32 %v1358_v63, %v1358_v63  ;;  %v329_v14 = vsel %vm303_vm0, %v252_v61, 0.0  ;;  %v255_v18 = vmul.f32 %v1367_v7, %v1367_v7 }
  0x1b   : > { %v312_v37 = vadd.f32 %v311_v28, %v310_v31  ;;  %v331_v19 = vsel %vm303_vm0, %v253_v1, 0.0  ;;  %v256_v23 = vmul.f32 %v1379_v15, %v1379_v15  ;;  %v257_v28 = vmul.f32 %v1385_v21, %v1385_v21  ;;  %v481_v31 = vld [vmem:[%s2204_s1 + $0x88] sm:$0xff] }
  0x1c   : > { %v333_v24 = vsel %vm303_vm0, %v254_v13, 0.0 }
  0x1d   : > { %v314_v41 = vadd.f32 %v313_v35, %v312_v37  ;;  %v479_v35 = vld [vmem:[%s2204_s1 + $0x78] sm:$0xff]  ;;  %v258_v37 = vmul.f32 %v1391_v26, %v1391_v26  ;;  %v337_v38 = vsel %vm303_vm0, %v256_v23, 0.0  ;;  %v1466_v23 = vld [vmem:[%s1243_s22 + $0xe0] sm:$0xff] }
  0x1e   : > { %634 = vperm.xlu2 %1163, %v472_v29   ;;  %v335_v29 = vsel %vm303_vm0, %v255_v18, 0.0  ;;  %2248 = vst [vmem:[#allocation6_spill] sm:$0xff] %v1466_v23 }
  0x1f   : > { %629 = vperm.xlu1 %1162, %v471_v32   ;;  %624 = vperm.xlu0 %1161, %v470_v33   ;;  %v316_v45 = vadd.f32 %v315_v39, %v314_v41  ;;  %v1400_v32 = vld [vmem:[%s1243_s22 + $0xa0] sm:$0xff]  ;;  %v1412_v39 = vld [vmem:[%s1243_s22 + $0xa8] sm:$0xff] }
  0x20   : > { %2244 = vst [vmem:[#allocation2_spill] sm:$0xff] %v1412_v39  ;;  %v259_v42 = vmul.f32 %v1400_v32, %v1400_v32 }
  0x21   : > { %v318_v50 = vadd.f32 %v317_v43, %v316_v45  ;;  %v339_v43 = vsel %vm303_vm0, %v257_v28, 0.0  ;;  %v1418_v45 = vld [vmem:[%s1243_s22 + $0xb0] sm:$0xff]  ;;  %v485_v28 = vld [vmem:[%s2204_s1 + $0xa8] sm:$0xff] }
  0x22   : > { %v343_v53 = vsel %vm303_vm0, %v259_v42, 0.0 }
  0x23   : > { %v320_v56 = vadd.f32 %v319_v47, %v318_v50  ;;  %v260_v47 = vmul.f32 %v1412_v39, %v1412_v39  ;;  %v1424_v50 = vld [vmem:[%s1243_s22 + $0xb8] sm:$0xff] }
  0x24   : > { %v262_v61 = vmul.f32 %v1424_v50, %v1424_v50 }
  0x25   : > { %v322_v60 = vadd.f32 %v321_v54, %v320_v56  ;;  %v484_v54 = vld [vmem:[%s2204_s1 + $0xa0] sm:$0xff] }
  0x26   : > { %649 = vperm.xlu2 %1163, %v475_v48   ;;  %v341_v48 = vsel %vm303_vm0, %v258_v37, 0.0  ;;  %v1433_v56 = vld [vmem:[%s1243_s22 + $0xc0] sm:$0xff]  ;;  %v349_v13 = vsel %vm303_vm0, %v262_v61, 0.0 }
  0x27   : > { %644 = vperm.xlu1 %1162, %v474_v51   ;;  %639 = vperm.xlu0 %1161, %v473_v52   ;;  %v324_v0 = vadd.f32 %v323_v58, %v322_v60  ;;  %v261_v52 = vmul.f32 %v1418_v45, %v1418_v45  ;;  %2245 = vst [vmem:[#allocation3_spill] sm:$0xff] %v1433_v56  ;;  %v483_v58 = vld [vmem:[%s2204_s1 + $0x98] sm:$0xff]  ;;  %v482_v60 = vld [vmem:[%s2204_s1 + $0x90] sm:$0xff] }
  0x29   : > { %v326_v10 = vadd.f32 %v325_v62, %v324_v0  ;;  %v345_v62 = vsel %vm303_vm0, %v260_v47, 0.0  ;;  %v1445_v0 = vld [vmem:[%s1243_s22 + $0xc8] sm:$0xff] }
  0x2a   : > { %2246 = vst [vmem:[#allocation4_spill] sm:$0xff] %v1445_v0 }
  0x2b   : > { %v328_v17 = vadd.f32 %v327_v2, %v326_v10  ;;  %v263_v2 = vmul.f32 %v1433_v56, %v1433_v56  ;;  %v1451_v10 = vld [vmem:[%s1243_s22 + $0xd0] sm:$0xff] }
  0x2c   : > { %v265_v18 = vmul.f32 %v1451_v10, %v1451_v10 }
  0x2d   : > { %v330_v22 = vadd.f32 %v329_v14, %v328_v17  ;;  %v1457_v14 = vld [vmem:[%s1243_s22 + $0xd8] sm:$0xff] }
  0x2e   : > { %664 = vperm.xlu2 %1163, %v478_v3   ;;  %v347_v3 = vsel %vm303_vm0, %v261_v52, 0.0  ;;  %2247 = vst [vmem:[#allocation5_spill] sm:$0xff] %v1457_v14  ;;  %v355_v37 = vsel %vm303_vm0, %v265_v18, 0.0  ;;  %v490_v52 = vld [vmem:[%s2204_s1 + $0xd0] sm:$0xff]  ;;  %v1523_v18 = vld [vmem:[%s1243_s22 + $0x118] sm:$0xff] }
  0x2f   : > { %659 = vperm.xlu1 %1162, %v477_v11   ;;  %654 = vperm.xlu0 %1161, %v476_v12   ;;  %v332_v27 = vadd.f32 %v331_v19, %v330_v22  ;;  %v264_v12 = vmul.f32 %v1445_v0, %v1445_v0  ;;  %v351_v19 = vsel %vm303_vm0, %v263_v2, 0.0  ;;  %v487_v22 = vld [vmem:[%s2204_s1 + $0xb8] sm:$0xff]  ;;  %2253 = vst [vmem:[#allocation11_spill] sm:$0xff] %v1523_v18 }
  0x30   : > { %v527_v0 = vld [vmem:[%s2204_s1 + $0x1f8] sm:$0xff] }
  0x31   : > { %v334_v33 = vadd.f32 %v333_v24, %v332_v27  ;;  %v486_v27 = vld [vmem:[%s2204_s1 + $0xb0] sm:$0xff] }
  0x33   : > { %v336_v41 = vadd.f32 %v335_v29, %v334_v33  ;;  %v266_v29 = vmul.f32 %v1457_v14, %v1457_v14  ;;  %v1478_v33 = vld [vmem:[%s1243_s22 + $0xe8] sm:$0xff] }
  0x34   : > { %v268_v42 = vmul.f32 %v1478_v33, %v1478_v33 }
  0x35   : > { %v338_v46 = vadd.f32 %v337_v38, %v336_v41  ;;  %v1484_v38 = vld [vmem:[%s1243_s22 + $0xf0] sm:$0xff] }
  0x36   : > { %679 = vperm.xlu2 %1163, %v481_v31   ;;  %v353_v31 = vsel %vm303_vm0, %v264_v12, 0.0  ;;  %2249 = vst [vmem:[#allocation7_spill] sm:$0xff] %v1484_v38  ;;  %v361_v61 = vsel %vm303_vm0, %v268_v42, 0.0 }
  0x37   : > { %674 = vperm.xlu1 %1162, %v480_v34   ;;  %669 = vperm.xlu0 %1161, %v479_v35   ;;  %v340_v51 = vadd.f32 %v339_v43, %v338_v46  ;;  %v267_v35 = vmul.f32 %v1466_v23, %v1466_v23  ;;  %v357_v43 = vsel %vm303_vm0, %v266_v29, 0.0  ;;  %v1490_v46 = vld [vmem:[%s1243_s22 + $0xf8] sm:$0xff] }
  0x38   : > { %2250 = vst [vmem:[#allocation8_spill] sm:$0xff] %v1490_v46 }
  0x39   : > { %v342_v57 = vadd.f32 %v341_v48, %v340_v51  ;;  %v269_v48 = vmul.f32 %v1484_v38, %v1484_v38  ;;  %v359_v51 = vsel %vm303_vm0, %v267_v35, 0.0  ;;  %v274_v35 = vmul.f32 %v1523_v18, %v1523_v18  ;;  %v526_v38 = vld [vmem:[%s2204_s1 + $0x1f0] sm:$0xff] }
  0x3b   : > { %v344_v1 = vadd.f32 %v343_v53, %v342_v57  ;;  %v1499_v53 = vld [vmem:[%s1243_s22 + $0x100] sm:$0xff]  ;;  %v489_v57 = vld [vmem:[%s2204_s1 + $0xc8] sm:$0xff] }
  0x3c   : > { %v271_v2 = vmul.f32 %v1499_v53, %v1499_v53 }
  0x3d   : > { %v346_v11 = vadd.f32 %v345_v62, %v344_v1  ;;  %v1511_v62 = vld [vmem:[%s1243_s22 + $0x108] sm:$0xff] }
  0x3e   : > { %694 = vperm.xlu2 %1163, %v484_v54   ;;  %2251 = vst [vmem:[#allocation9_spill] sm:$0xff] %v1511_v62 }
  0x3f   : > { %689 = vperm.xlu1 %1162, %v483_v58   ;;  %684 = vperm.xlu0 %1161, %v482_v60   ;;  %v348_v17 = vadd.f32 %v347_v3, %v346_v11  ;;  %v488_v58 = vld [vmem:[%s2204_s1 + $0xc0] sm:$0xff]  ;;  %v270_v60 = vmul.f32 %v1490_v46, %v1490_v46  ;;  %v363_v3 = vsel %vm303_vm0, %v269_v48, 0.0  ;;  %v1517_v11 = vld [vmem:[%s1243_s22 + $0x110] sm:$0xff] }
  0x40   : > { %2252 = vst [vmem:[#allocation10_spill] sm:$0xff] %v1517_v11  ;;  %v1550_v48 = vld [vmem:[%s1243_s22 + $0x130] sm:$0xff] }
  0x41   : > { %v350_v24 = vadd.f32 %v349_v13, %v348_v17  ;;  %v272_v13 = vmul.f32 %v1511_v62, %v1511_v62  ;;  %v365_v17 = vsel %vm303_vm0, %v270_v60, 0.0  ;;  %2256 = vst [vmem:[#allocation14_spill] sm:$0xff] %v1550_v48  ;;  %v277_v60 = vmul.f32 %v1550_v48, %v1550_v48 }
  0x43   : > { %v352_v34 = vadd.f32 %v351_v19, %v350_v24  ;;  %v367_v24 = vsel %vm303_vm0, %v271_v2, 0.0  ;;  %v1565_v2 = vld [vmem:[%s1243_s22 + $0x140] sm:$0xff] }
  0x44   : > { %2258 = vst [vmem:[#allocation16_spill] sm:$0xff] %v1565_v2 }
  0x45   : > { %v354_v41 = vadd.f32 %v353_v31, %v352_v34  ;;  %v492_v31 = vld [vmem:[%s2204_s1 + $0xe0] sm:$0xff]  ;;  %v491_v34 = vld [vmem:[%s2204_s1 + $0xd8] sm:$0xff] }
  0x46   : > { %709 = vperm.xlu2 %1163, %v487_v22   ;;  %v273_v22 = vmul.f32 %v1517_v11, %v1517_v11 }
  0x47   : > { %704 = vperm.xlu1 %1162, %v486_v27   ;;  %699 = vperm.xlu0 %1161, %v485_v28   ;;  %v356_v47 = vadd.f32 %v355_v37, %v354_v41  ;;  %v493_v27 = vld [vmem:[%s2204_s1 + $0xe8] sm:$0xff]  ;;  %v1532_v28 = vld [vmem:[%s1243_s22 + $0x120] sm:$0xff]  ;;  %v369_v37 = vsel %vm303_vm0, %v272_v13, 0.0  ;;  %v494_v13 = vld [vmem:[%s2204_s1 + $0xf0] sm:$0xff] }
  0x48   : > { %2254 = vst [vmem:[#allocation12_spill] sm:$0xff] %v1532_v28  ;;  %v1544_v41 = vld [vmem:[%s1243_s22 + $0x128] sm:$0xff] }
  0x49   : > { %v358_v54 = vadd.f32 %v357_v43, %v356_v47  ;;  %2255 = vst [vmem:[#allocation13_spill] sm:$0xff] %v1544_v41  ;;  %v275_v43 = vmul.f32 %v1532_v28, %v1532_v28  ;;  %v371_v47 = vsel %vm303_vm0, %v273_v22, 0.0  ;;  %v1577_v22 = vld [vmem:[%s1243_s22 + $0x148] sm:$0xff] }
  0x4a   : > { %2259 = vst [vmem:[#allocation17_spill] sm:$0xff] %v1577_v22 }
  0x4b   : > { %v360_v1 = vadd.f32 %v359_v51, %v358_v54  ;;  %v373_v54 = vsel %vm303_vm0, %v274_v35, 0.0  ;;  %v280_v35 = vmul.f32 %v1577_v22, %v1577_v22 }
  0x4d   : > { %v362_v12 = vadd.f32 %v361_v61, %v360_v1  ;;  %v375_v61 = vsel %vm303_vm0, %v275_v43, 0.0  ;;  %v496_v1 = vld [vmem:[%s2204_s1 + $0x100] sm:$0xff] }
  0x4e   : > { %724 = vperm.xlu2 %1163, %v490_v52   ;;  %v276_v52 = vmul.f32 %v1544_v41, %v1544_v41 }
  0x4f   : > { %719 = vperm.xlu1 %1162, %v489_v57   ;;  %714 = vperm.xlu0 %1161, %v488_v58   ;;  %v364_v19 = vadd.f32 %v363_v3, %v362_v12  ;;  %v1556_v57 = vld [vmem:[%s1243_s22 + $0x138] sm:$0xff] }
  0x50   : > { %2257 = vst [vmem:[#allocation15_spill] sm:$0xff] %v1556_v57  ;;  %v495_v12 = vld [vmem:[%s2204_s1 + $0xf8] sm:$0xff] }
  0x51   : > { %v366_v29 = vadd.f32 %v365_v17, %v364_v19  ;;  %v278_v17 = vmul.f32 %v1556_v57, %v1556_v57  ;;  %v377_v19 = vsel %vm303_vm0, %v276_v52, 0.0  ;;  %v499_v52 = vld [vmem:[%s2204_s1 + $0x118] sm:$0xff] }
  0x53   : > { %v368_v42 = vadd.f32 %v367_v24, %v366_v29  ;;  %v379_v29 = vsel %vm303_vm0, %v277_v60, 0.0  ;;  %v498_v60 = vld [vmem:[%s2204_s1 + $0x110] sm:$0xff] }
  0x55   : > { %v370_v51 = vadd.f32 %v369_v37, %v368_v42  ;;  %v381_v37 = vsel %vm303_vm0, %v278_v17, 0.0  ;;  %v1589_v42 = vld [vmem:[%s1243_s22 + $0x158] sm:$0xff] }
  0x56   : > { %739 = vperm.xlu2 %1163, %v493_v27   ;;  %v279_v27 = vmul.f32 %v1565_v2, %v1565_v2  ;;  %2261 = vst [vmem:[#allocation19_spill] sm:$0xff] %v1589_v42 }
  0x57   : > { %734 = vperm.xlu1 %1162, %v492_v31   ;;  %729 = vperm.xlu0 %1161, %v491_v34   ;;  %v372_v58 = vadd.f32 %v371_v47, %v370_v51  ;;  %v1583_v31 = vld [vmem:[%s1243_s22 + $0x150] sm:$0xff] }
  0x58   : > { %2260 = vst [vmem:[#allocation18_spill] sm:$0xff] %v1583_v31  ;;  %v281_v47 = vmul.f32 %v1583_v31, %v1583_v31  ;;  %v383_v51 = vsel %vm303_vm0, %v279_v27, 0.0 }
  0x59   : > { %v374_v3 = vadd.f32 %v373_v54, %v372_v58  ;;  %v1598_v54 = vld [vmem:[%s1243_s22 + $0x160] sm:$0xff] }
  0x5a   : > { %2262 = vst [vmem:[#allocation20_spill] sm:$0xff] %v1598_v54  ;;  %v283_v17 = vmul.f32 %v1598_v54, %v1598_v54 }
  0x5b   : > { %v376_v24 = vadd.f32 %v375_v61, %v374_v3  ;;  %v497_v61 = vld [vmem:[%s2204_s1 + $0x108] sm:$0xff]  ;;  %v385_v3 = vsel %vm303_vm0, %v280_v35, 0.0 }
  0x5d   : > { %v378_v34 = vadd.f32 %v377_v19, %v376_v24  ;;  %v387_v19 = vsel %vm303_vm0, %v281_v47, 0.0  ;;  %v1616_v24 = vld [vmem:[%s1243_s22 + $0x170] sm:$0xff] }
  0x5e   : > { %754 = vperm.xlu2 %1163, %v496_v1   ;;  %v282_v1 = vmul.f32 %v1589_v42, %v1589_v42  ;;  %2264 = vst [vmem:[#allocation22_spill] sm:$0xff] %v1616_v24  ;;  %v285_v47 = vmul.f32 %v1616_v24, %v1616_v24 }
  0x5f   : > { %749 = vperm.xlu1 %1162, %v495_v12   ;;  %744 = vperm.xlu0 %1161, %v494_v13   ;;  %v380_v43 = vadd.f32 %v379_v29, %v378_v34  ;;  %v1610_v12 = vld [vmem:[%s1243_s22 + $0x168] sm:$0xff] }
  0x60   : > { %2263 = vst [vmem:[#allocation21_spill] sm:$0xff] %v1610_v12  ;;  %v284_v34 = vmul.f32 %v1610_v12, %v1610_v12  ;;  %v389_v35 = vsel %vm303_vm0, %v282_v1, 0.0 }
  0x61   : > { %v382_v58 = vadd.f32 %v381_v37, %v380_v43  ;;  %v1624_v37 = vld [vmem:[%s1243_s22 + $0x178] sm:$0xff] }
  0x62   : > { %2265 = vst [vmem:[#allocation23_spill] sm:$0xff] %v1624_v37  ;;  %v393_v1 = vsel %vm303_vm0, %v284_v34, 0.0 }
  0x63   : > { %v384_v13 = vadd.f32 %v383_v51, %v382_v58  ;;  %v391_v51 = vsel %vm303_vm0, %v283_v17, 0.0  ;;  %v1645_v17 = vld [vmem:[%s1243_s22 + $0x188] sm:$0xff] }
  0x64   : > { %2267 = vst [vmem:[#allocation25_spill] sm:$0xff] %v1645_v17  ;;  %v288_v12 = vmul.f32 %v1645_v17, %v1645_v17 }
  0x65   : > { %v386_v27 = vadd.f32 %v385_v3, %v384_v13  ;;  %v501_v3 = vld [vmem:[%s2204_s1 + $0x128] sm:$0xff]  ;;  %v500_v13 = vld [vmem:[%s2204_s1 + $0x120] sm:$0xff] }
  0x66   : > { %769 = vperm.xlu2 %1163, %v499_v52   ;;  %v1630_v52 = vld [vmem:[%s1243_s22 + $0x180] sm:$0xff] }
  0x67   : > { %764 = vperm.xlu1 %1162, %v498_v60   ;;  %759 = vperm.xlu0 %1161, %v497_v61   ;;  %v388_v43 = vadd.f32 %v387_v19, %v386_v27  ;;  %2266 = vst [vmem:[#allocation24_spill] sm:$0xff] %v1630_v52  ;;  %v502_v60 = vld [vmem:[%s2204_s1 + $0x130] sm:$0xff]  ;;  %v286_v61 = vmul.f32 %v1624_v37, %v1624_v37  ;;  %v1768_v37 = vld [vmem:[%s1243_s22 + $0x1f8] sm:$0xff] }
  0x68   : > { %v1618_v29 = vpop.permute.xlu2 %614  ;;  %v287_v27 = vmul.f32 %v1630_v52, %v1630_v52  ;;  %v1686_v52 = vld [vmem:[%s1243_s22 + $0x1b0] sm:$0xff]  ;;  %2281 = vst [vmem:[#allocation39_spill] sm:$0xff] %v1768_v37 }
  0x69   : > { %v390_v58 = vadd.f32 %v389_v35, %v388_v43  ;;  %v395_v35 = vsel %vm303_vm0, %v285_v47, 0.0  ;;  %v1651_v43 = vld [vmem:[%s1243_s22 + $0x190] sm:$0xff]  ;;  %v397_v24 = vsel %vm303_vm0, %v286_v61, 0.0  ;;  %2272 = vst [vmem:[#allocation30_spill] sm:$0xff] %v1686_v52 }
  0x6a   : > { %2268 = vst [vmem:[#allocation26_spill] sm:$0xff] %v1651_v43  ;;  %v289_v47 = vmul.f32 %v1651_v43, %v1651_v43 }
  0x6b   : > { %v392_v19 = vadd.f32 %v391_v51, %v390_v58  ;;  %v1659_v51 = vld [vmem:[%s1243_s22 + $0x198] sm:$0xff] }
  0x6c   : > { %2269 = vst [vmem:[#allocation27_spill] sm:$0xff] %v1659_v51  ;;  %v290_v61 = vmul.f32 %v1659_v51, %v1659_v51  ;;  %v403_v51 = vsel %vm303_vm0, %v289_v47, 0.0  ;;  %v293_v47 = vmul.f32 %v1686_v52, %v1686_v52 }
  0x6d   : > { %v394_v34 = vadd.f32 %v393_v1, %v392_v19  ;;  %v1665_v1 = vld [vmem:[%s1243_s22 + $0x1a0] sm:$0xff]  ;;  %v401_v19 = vsel %vm303_vm0, %v288_v12, 0.0 }
  0x6e   : > { %784 = vperm.xlu2 %1163, %v502_v60   ;;  %v399_v60 = vsel %vm303_vm0, %v287_v27, 0.0  ;;  %2270 = vst [vmem:[#allocation28_spill] sm:$0xff] %v1665_v1  ;;  %v503_v27 = vld [vmem:[%s2204_s1 + $0x138] sm:$0xff]  ;;  %v405_v42 = vsel %vm303_vm0, %v290_v61, 0.0  ;;  %v411_v52 = vsel %vm303_vm0, %v293_v47, 0.0 }
  0x6f   : > { %779 = vperm.xlu1 %1162, %v501_v3   ;;  %774 = vperm.xlu0 %1161, %v500_v13   ;;  %v396_v58 = vadd.f32 %v395_v35, %v394_v34  ;;  %v505_v13 = vld [vmem:[%s2204_s1 + $0x148] sm:$0xff]  ;;  %v504_v35 = vld [vmem:[%s2204_s1 + $0x140] sm:$0xff] }
  0x70   : > { %v1656_v31 = vpop.permute.xlu2 %619  ;;  %v1680_v34 = vld [vmem:[%s1243_s22 + $0x1a8] sm:$0xff] }
  0x71   : > { %v398_v3 = vadd.f32 %v397_v24, %v396_v58  ;;  %2271 = vst [vmem:[#allocation29_spill] sm:$0xff] %v1680_v34  ;;  %v291_v58 = vmul.f32 %v1665_v1, %v1665_v1  ;;  %v292_v17 = vmul.f32 %v1680_v34, %v1680_v34 }
  0x73   : > { %v400_v24 = vadd.f32 %v399_v60, %v398_v3  ;;  %v1694_v60 = vld [vmem:[%s1243_s22 + $0x1b8] sm:$0xff] }
  0x74   : > { %2273 = vst [vmem:[#allocation31_spill] sm:$0xff] %v1694_v60  ;;  %v294_v61 = vmul.f32 %v1694_v60, %v1694_v60  ;;  %v1721_v60 = vld [vmem:[%s1243_s22 + $0x1d0] sm:$0xff] }
  0x75   : > { %v402_v12 = vadd.f32 %v401_v19, %v400_v24  ;;  %v1700_v19 = vld [vmem:[%s1243_s22 + $0x1c0] sm:$0xff]  ;;  %v409_v24 = vsel %vm303_vm0, %v292_v17, 0.0  ;;  %2276 = vst [vmem:[#allocation34_spill] sm:$0xff] %v1721_v60 }
  0x76   : > { %799 = vperm.xlu2 %1163, %v505_v13   ;;  %v407_v13 = vsel %vm303_vm0, %v291_v58, 0.0  ;;  %2274 = vst [vmem:[#allocation32_spill] sm:$0xff] %v1700_v19  ;;  %v506_v58 = vld [vmem:[%s2204_s1 + $0x150] sm:$0xff]  ;;  %v413_v34 = vsel %vm303_vm0, %v294_v61, 0.0  ;;  %v511_v61 = vld [vmem:[%s2204_s1 + $0x178] sm:$0xff] }
  0x77   : > { %794 = vperm.xlu1 %1162, %v504_v35   ;;  %789 = vperm.xlu0 %1161, %v503_v27   ;;  %v404_v3 = vadd.f32 %v403_v51, %v402_v12  ;;  %v508_v27 = vld [vmem:[%s2204_s1 + $0x160] sm:$0xff]  ;;  %v507_v51 = vld [vmem:[%s2204_s1 + $0x158] sm:$0xff]  ;;  %v1715_v12 = vld [vmem:[%s1243_s22 + $0x1c8] sm:$0xff] }
  0x78   : > { %v1691_v57 = vpop.permute.xlu2 %634  ;;  %2275 = vst [vmem:[#allocation33_spill] sm:$0xff] %v1715_v12  ;;  %v296_v1 = vmul.f32 %v1715_v12, %v1715_v12  ;;  %v1754_v12 = vld [vmem:[%s1243_s22 + $0x1e8] sm:$0xff] }
  0x79   : > { %v406_v35 = vadd.f32 %v405_v42, %v404_v3  ;;  %v295_v3 = vmul.f32 %v1700_v19, %v1700_v19  ;;  %2279 = vst [vmem:[#allocation37_spill] sm:$0xff] %v1754_v12  ;;  %v300_v43 = vmul.f32 %v1754_v12, %v1754_v12 }
  0x7b   : > { %v408_v42 = vadd.f32 %v407_v13, %v406_v35  ;;  %v1729_v13 = vld [vmem:[%s1243_s22 + $0x1d8] sm:$0xff] }
  0x7c   : > { %2277 = vst [vmem:[#allocation35_spill] sm:$0xff] %v1729_v13 }
  0x7d   : > { %v410_v17 = vadd.f32 %v409_v24, %v408_v42  ;;  %v415_v24 = vsel %vm303_vm0, %v295_v3, 0.0  ;;  %v417_v42 = vsel %vm303_vm0, %v296_v1, 0.0  ;;  %v509_v3 = vld [vmem:[%s2204_s1 + $0x168] sm:$0xff] }
  0x7e   : > { %814 = vperm.xlu2 %1163, %v508_v27   ;;  %v297_v27 = vmul.f32 %v1721_v60, %v1721_v60 }
  0x7f   : > { %809 = vperm.xlu1 %1162, %v507_v51   ;;  %804 = vperm.xlu0 %1161, %v506_v58   ;;  %v412_v35 = vadd.f32 %v411_v52, %v410_v17  ;;  %v1739_v51 = vld [vmem:[%s1243_s22 + $0x1e0] sm:$0xff]  ;;  %v298_v52 = vmul.f32 %v1729_v13, %v1729_v13  ;;  %v510_v17 = vld [vmem:[%s2204_s1 + $0x170] sm:$0xff] }
  0x80   : > { %v1726_v2 = vpop.permute.xlu2 %649  ;;  %2278 = vst [vmem:[#allocation36_spill] sm:$0xff] %v1739_v51  ;;  %v419_v60 = vsel %vm303_vm0, %v297_v27, 0.0  ;;  %v1760_v13 = vld [vmem:[%s1243_s22 + $0x1f0] sm:$0xff] }
  0x81   : > { %v1731_v19 = vpop.permute.xlu1 %604  ;;  %v1733_v47 = vpop.permute.xlu0 %594  ;;  %v414_v58 = vadd.f32 %v413_v34, %v412_v35  ;;  %v299_v35 = vmul.f32 %v1739_v51, %v1739_v51  ;;  %2280 = vst [vmem:[#allocation38_spill] sm:$0xff] %v1760_v13  ;;  %v421_v28 = vsel %vm303_vm0, %v298_v52, 0.0  ;;  %v301_v27 = vmul.f32 %v1760_v13, %v1760_v13 }
  0x82   : > { %v302_v52 = vmul.f32 %v1768_v37, %v1768_v37 }
  0x83   : > { %v416_v34 = vadd.f32 %v415_v24, %v414_v58 }
  0x85   : > { %v418_v1 = vadd.f32 %v417_v42, %v416_v34  ;;  %v512_v34 = vld [vmem:[%s2204_s1 + $0x180] sm:$0xff] }
  0x86   : > { %829 = vperm.xlu2 %1163, %v511_v61   ;;  %v423_v61 = vsel %vm303_vm0, %v299_v35, 0.0 }
  0x87   : > { %824 = vperm.xlu1 %1162, %v510_v17   ;;  %819 = vperm.xlu0 %1161, %v509_v3   ;;  %v420_v24 = vadd.f32 %v419_v60, %v418_v1  ;;  %v514_v17 = vld [vmem:[%s2204_s1 + $0x190] sm:$0xff]  ;;  %v425_v3 = vsel %vm303_vm0, %v300_v43, 0.0  ;;  %v513_v60 = vld [vmem:[%s2204_s1 + $0x188] sm:$0xff] }
  0x88   : > { %v1765_v41 = vpop.permute.xlu2 %664 }
  0x89   : > { %v1770_v58 = vpop.permute.xlu1 %609  ;;  %v1772_v51 = vpop.permute.xlu0 %599  ;;  %v422_v42 = vadd.f32 %v421_v28, %v420_v24  ;;  %v427_v28 = vsel %vm303_vm0, %v301_v27, 0.0  ;;  %v429_v24 = vsel %vm303_vm0, %v302_v52, 0.0  ;;  %v516_v27 = vld [vmem:[%s2204_s1 + $0x1a0] sm:$0xff] }
  0x8b   : > { %v424_v1 = vadd.f32 %v423_v61, %v422_v42  ;;  %v517_v61 = vld [vmem:[%s2204_s1 + $0x1a8] sm:$0xff]  ;;  %v515_v42 = vld [vmem:[%s2204_s1 + $0x198] sm:$0xff] }
  0x8d   : > { %v426_v35 = vadd.f32 %v425_v3, %v424_v1 }
  0x8e   : > { %844 = vperm.xlu2 %1163, %v514_v17  }
  0x8f   : > { %839 = vperm.xlu1 %1162, %v513_v60   ;;  %834 = vperm.xlu0 %1161, %v512_v34   ;;  %v428_v43 = vadd.f32 %v427_v28, %v426_v35  ;;  %v520_v35 = vld [vmem:[%s2204_s1 + $0x1c0] sm:$0xff] }
  0x90   : > { %v1791_v37 = vpop.permute.xlu2 %679 }
  0x91   : > { %v1793_v12 = vpop.permute.xlu1 %629  ;;  %v1795_v13 = vpop.permute.xlu0 %624  ;;  %v430_v62 = vadd.f32 %v429_v24, %v428_v43  ;;  %v519_v24 = vld [vmem:[%s2204_s1 + $0x1b8] sm:$0xff] }
  0x93   : > { %v431_v17 = vrot.slane %v430_v62, 4 }
  0x95   : > { %v432_v52 = vadd.f32 %v431_v17, %v430_v62  ;;  %v518_v62 = vld [vmem:[%s2204_s1 + $0x1b0] sm:$0xff] }
  0x96   : > { %859 = vperm.xlu2 %1163, %v517_v61  }
  0x97   : > { %854 = vperm.xlu1 %1162, %v516_v27   ;;  %849 = vperm.xlu0 %1161, %v515_v42   ;;  %v433_v60 = vrot.slane %v432_v52, 2 }
  0x98   : > { %v1806_v3 = vpop.permute.xlu2 %694 }
  0x99   : > { %v1808_v34 = vpop.permute.xlu1 %644  ;;  %v1810_v1 = vpop.permute.xlu0 %639  ;;  %v434_v28 = vadd.f32 %v433_v60, %v432_v52  ;;  %v523_v52 = vld [vmem:[%s2204_s1 + $0x1d8] sm:$0xff]  ;;  %v522_v60 = vld [vmem:[%s2204_s1 + $0x1d0] sm:$0xff] }
  0x9b   : > { %v435_v43 = vrot.slane %v434_v28, 1 }
  0x9d   : > { %v436_v61 = vadd.f32 %v435_v43, %v434_v28  ;;  %v521_v28 = vld [vmem:[%s2204_s1 + $0x1c8] sm:$0xff] }
  0x9e   : > { %874 = vperm.xlu2 %1163, %v520_v35  }
  0x9f   : > { %869 = vperm.xlu1 %1162, %v519_v24   ;;  %864 = vperm.xlu0 %1161, %v518_v62   ;;  %1164 = vrsqrt.f32 %v436_v61  ;;  %vm444_vm1 = vcmp.eq.f32.partialorder %v436_v61, inf  ;;  %vm446_vm2 = vcmp.eq.f32.partialorder %v436_v61, 0.0 }
  0xa0   : > { %v1821_v27 = vpop.permute.xlu2 %709 }
  0xa1   : > { %v1823_v42 = vpop.permute.xlu1 %659  ;;  %v1825_v17 = vpop.permute.xlu0 %654 }
  0xa5   : > { %v1165_v35 = vpop.eup %1164 }
  0xa6   : > { %889 = vperm.xlu2 %1163, %v523_v52   ;;  %v438_v24 = vmul.f32 %v1165_v35, %v436_v61  ;;  %v525_v52 = vld [vmem:[%s2204_s1 + $0x1e8] sm:$0xff] }
  0xa7   : > { %884 = vperm.xlu1 %1162, %v522_v60   ;;  %879 = vperm.xlu0 %1161, %v521_v28   ;;  %v524_v60 = vld [vmem:[%s2204_s1 + $0x1e0] sm:$0xff] }
  0xa8   : > { %v1836_v62 = vpop.permute.xlu2 %724  ;;  %v439_v54 = vmul.f32 %v1165_v35, %v438_v24  ;;  %v447_v24 = vand.u32 2147483648, %v436_v61 }
  0xa9   : > { %v1838_v43 = vpop.permute.xlu1 %674  ;;  %v1840_v11 = vpop.permute.xlu0 %669 }
  0xaa   : > { %v440_v46 = vmul.f32 0.5, %v439_v54 }
  0xac   : > { %v441_v28 = vsub.f32 1.5, %v440_v46 }
  0xae   : > { %904 = vperm.xlu2 %1163, %v526_v38   ;;  %v442_v22 = vmul.f32 %v1165_v35, %v441_v28 }
  0xaf   : > { %899 = vperm.xlu1 %1162, %v525_v52   ;;  %894 = vperm.xlu0 %1161, %v524_v60  }
  0xb0   : > { %v1851_v14 = vpop.permute.xlu2 %739  ;;  %v443_v48 = vmul.f32 %v442_v22, %v436_v61 }
  0xb1   : > { %v1853_v23 = vpop.permute.xlu1 %689  ;;  %v1855_v54 = vpop.permute.xlu0 %684 }
  0xb2   : > { %2282 = vst [vmem:[#allocation40_spill] sm:$0xff] %v1855_v54  ;;  %v445_v56 = vsel %vm444_vm1, %v436_v61, %v443_v48 }
  0xb3   : > { %v448_v46 = vsel %vm446_vm2, %v447_v24, %v445_v56 }
  0xb4   : > { %v449_v38 = vadd.f32 1e-10, %v448_v46 }
  0xb6   : > { %1166 = vrcp.f32 %v449_v38  ;;  %v461_v54 = vand.u32 2147483648, %v449_v38  ;;  %vm455_vm3 = vweird.f32 %v449_v38  ;;  %v459_v61 = vand.u32 2147483647, %v449_v38 }
  0xb7   : > { %909 = vperm.xlu0 %1161, %v527_v0  }
  0xb8   : > { %v1860_v35 = vpop.permute.xlu2 %754  ;;  %v462_v24 = vor.u32 1.1754944e-38, %v461_v54  ;;  %vm460_vm6 = vcmp.eq.f32.partialorder %v459_v61, 8.507059e+37 }
  0xb9   : > { %2283 = vst [vmem:[#allocation41_spill] sm:$0xff] %v1860_v35  ;;  %v1862_v52 = vpop.permute.xlu1 %704  ;;  %v1864_v60 = vpop.permute.xlu0 %699 }
  0xba   : > { %2284 = vst [vmem:[#allocation42_spill] sm:$0xff] %v1862_v52 }
  0xbb   : > { %2285 = vst [vmem:[#allocation43_spill] sm:$0xff] %v1864_v60 }
  0xbc   : > { %v1167_v28 = vpop.eup %1166 }
  0xbd   : > { %v451_v18 = vmul.f32 %v1167_v28, %v449_v38  ;;  %vm456_vm4 = vweird.f32 %v1167_v28 }
  0xbe   : > { %vm457_vm5 = vmor %vm455_vm3, %vm456_vm4 }
  0xbf   : > { %v452_v48 = vsub.f32 1.0, %v451_v18 }
  0xc0   : > { %v1866_v22 = vpop.permute.xlu2 %769 }
  0xc1   : > { %v1868_v39 = vpop.permute.xlu1 %719  ;;  %v1870_v56 = vpop.permute.xlu0 %714  ;;  %v453_v0 = vmul.f32 %v1167_v28, %v452_v48 }
  0xc2   : > { %2286 = vst [vmem:[#allocation44_spill] sm:$0xff] %v1868_v39 }
  0xc3   : > { %v454_v46 = vadd.f32 %v1167_v28, %v453_v0 }
  0xc5   : > { %v458_v60 = vsel %vm457_vm5, %v1167_v28, %v454_v46 }
  0xc6   : > { %v1872_v52 = vsel %vm460_vm6, %v462_v24, %v458_v60 }
  0xc7   : > { %v532_v18 = vmul.f32 %v1872_v52, %v1261_v9  ;;  %v533_v38 = vmul.f32 %v1872_v52, %v1278_v16  ;;  %v536_v39 = vmul.f32 %v1872_v52, %v1301_v30  ;;  %v539_v48 = vmul.f32 %v1872_v52, %v1325_v44 }
  0xc8   : > { %v1874_v35 = vpop.permute.xlu2 %784  ;;  %v530_v9 = vmul.f32 %v1872_v52, %v1252_v6  ;;  %v528_v16 = vmul.f32 %v1872_v52, %v1246_v4  ;;  %v542_v28 = vmul.f32 %v1872_v52, %v1352_v59  ;;  %v531_v24 = vmul.f32 %v1872_v52, %v1258_v8 }
  0xc9   : > { %v1884_v54 = vpop.permute.xlu1 %734  ;;  %v1886_v61 = vpop.permute.xlu0 %729  ;;  %v916_v30 = vmul.f32 %v1618_v29, %v532_v18  ;;  %v917_v44 = vmul.f32 %v1656_v31, %v533_v38  ;;  %v920_v60 = vmul.f32 %v1691_v57, %v536_v39  ;;  %v923_v0 = vmul.f32 %v1726_v2, %v539_v48 }
  0xca   : > { %v914_v4 = vmul.f32 %v1731_v19, %v530_v9  ;;  %v529_v6 = vmul.f32 %v1872_v52, %v1249_v5  ;;  %v912_v39 = vmul.f32 %v1733_v47, %v528_v16  ;;  %v545_v59 = vmul.f32 %v1872_v52, %v1379_v15  ;;  %v2289_v9 = vld [vmem:[#allocation11_spill] sm:$0xff] }
  0xcb   : > { %980 = vst.msk [vmem:[%s1893_s7 + $0x20] sm:$0xff] %vm303_vm0, %v916_v30  ;;  %v926_v8 = vmul.f32 %v1765_v41, %v542_v28  ;;  %v535_v57 = vmul.f32 %v1872_v52, %v1292_v25  ;;  %v915_v5 = vmul.f32 %v1770_v58, %v531_v24  ;;  %v534_v2 = vmul.f32 %v1872_v52, %v1285_v20 }
  0xcc   : > { %981 = vst.msk [vmem:[%s1893_s7 + $0x28] sm:$0xff] %vm303_vm0, %v917_v44  ;;  %v913_v15 = vmul.f32 %v1772_v51, %v529_v6  ;;  %v548_v41 = vmul.f32 %v1872_v52, %v1400_v32  ;;  %v929_v20 = vmul.f32 %v1791_v37, %v545_v59  ;;  %v538_v19 = vmul.f32 %v1872_v52, %v1319_v40  ;;  %v2291_v44 = vld [vmem:[#allocation4_spill] sm:$0xff] }
  0xcd   : > { %984 = vst.msk [vmem:[%s1893_s7 + $0x40] sm:$0xff] %vm303_vm0, %v920_v60  ;;  %v919_v47 = vmul.f32 %v1793_v12, %v535_v57  ;;  %v537_v32 = vmul.f32 %v1872_v52, %v1313_v36  ;;  %v918_v51 = vmul.f32 %v1795_v13, %v534_v2  ;;  %v551_v58 = vmul.f32 %v1872_v52, %v1424_v50  ;;  %v2296_v2 = vld [vmem:[#allocation6_spill] sm:$0xff] }
  0xce   : > { %987 = vst.msk [vmem:[%s1893_s7 + $0x58] sm:$0xff] %vm303_vm0, %v923_v0  ;;  %v932_v40 = vmul.f32 %v1806_v3, %v548_v41  ;;  %v541_v37 = vmul.f32 %v1872_v52, %v1346_v55  ;;  %v922_v36 = vmul.f32 %v1808_v34, %v538_v19  ;;  %v540_v12 = vmul.f32 %v1872_v52, %v1334_v49  ;;  %v2292_v0 = vld [vmem:[#allocation42_spill] sm:$0xff]  ;;  %v2297_v41 = vld [vmem:[#allocation44_spill] sm:$0xff]  ;;  %v2298_v19 = vld [vmem:[#allocation5_spill] sm:$0xff] }
  0xcf   : > { %978 = vst.msk [vmem:[%s1893_s7 + $0x10] sm:$0xff] %vm303_vm0, %v914_v4  ;;  %v921_v50 = vmul.f32 %v1810_v1, %v537_v32  ;;  %v554_v13 = vmul.f32 %v1872_v52, %v1451_v10  ;;  %v935_v55 = vmul.f32 %v1821_v27, %v551_v58  ;;  %v544_v3 = vmul.f32 %v1872_v52, %v1367_v7  ;;  %v2293_v4 = vld [vmem:[#allocation3_spill] sm:$0xff] }
  0xd0   : > { %v1927_v31 = vpop.permute.xlu2 %799  ;;  %976 = vst.msk [vmem:[%s1893_s7] sm:$0xff] %vm303_vm0, %v912_v39  ;;  %v925_v49 = vmul.f32 %v1823_v42, %v541_v37  ;;  %v543_v1 = vmul.f32 %v1872_v52, %v1358_v63  ;;  %v924_v7 = vmul.f32 %v1825_v17, %v540_v12  ;;  %v557_v27 = vmul.f32 %v1872_v52, %v1478_v33  ;;  %v2294_v39 = vld [vmem:[#allocation43_spill] sm:$0xff] }
  0xd1   : > { %v1934_v25 = vpop.permute.xlu1 %749  ;;  %v1936_v29 = vpop.permute.xlu0 %744  ;;  %990 = vst.msk [vmem:[%s1893_s7 + $0x70] sm:$0xff] %vm303_vm0, %v926_v8  ;;  %v938_v42 = vmul.f32 %v1836_v62, %v554_v13  ;;  %v547_v63 = vmul.f32 %v1872_v52, %v1391_v26  ;;  %v928_v18 = vmul.f32 %v1838_v43, %v544_v3  ;;  %v546_v38 = vmul.f32 %v1872_v52, %v1385_v21  ;;  %v2287_v43 = vld [vmem:[#allocation2_spill] sm:$0xff]  ;;  %v2301_v12 = vld [vmem:[#allocation7_spill] sm:$0xff] }
  0xd2   : > { %979 = vst.msk [vmem:[%s1893_s7 + $0x18] sm:$0xff] %vm303_vm0, %v915_v5  ;;  %v927_v33 = vmul.f32 %v1840_v11, %v543_v1  ;;  %v560_v17 = vmul.f32 %v1872_v52, %v1499_v53  ;;  %v941_v26 = vmul.f32 %v1851_v14, %v557_v27  ;;  %v550_v62 = vmul.f32 %v1872_v52, %v1418_v45  ;;  %v2288_v53 = vld [vmem:[#allocation40_spill] sm:$0xff]  ;;  %v2290_v45 = vld [vmem:[#allocation41_spill] sm:$0xff]  ;;  %v2295_v8 = vld [vmem:[#allocation14_spill] sm:$0xff] }
  0xd3   : > { %977 = vst.msk [vmem:[%s1893_s7 + $0x8] sm:$0xff] %vm303_vm0, %v913_v15  ;;  %v931_v21 = vmul.f32 %v1853_v23, %v547_v63  ;;  %v549_v48 = vmul.f32 %v1872_v52, %v2287_v43  ;;  %v930_v11 = vmul.f32 %v2288_v53, %v546_v38  ;;  %v563_v16 = vmul.f32 %v1872_v52, %v2289_v9  ;;  %v2303_v1 = vld [vmem:[#allocation10_spill] sm:$0xff]  ;;  %v2310_v9 = vld [vmem:[#allocation15_spill] sm:$0xff] }
  0xd4   : > { %993 = vst.msk [vmem:[%s1893_s7 + $0x88] sm:$0xff] %vm303_vm0, %v929_v20  ;;  %v944_v30 = vmul.f32 %v2290_v45, %v560_v17  ;;  %v553_v23 = vmul.f32 %v1872_v52, %v2291_v44  ;;  %v934_v24 = vmul.f32 %v2292_v0, %v550_v62  ;;  %v552_v6 = vmul.f32 %v1872_v52, %v2293_v4  ;;  %v2311_v44 = vld [vmem:[#allocation29_spill] sm:$0xff]  ;;  %v2312_v0 = vld [vmem:[#allocation19_spill] sm:$0xff]  ;;  %v2313_v4 = vld [vmem:[#allocation18_spill] sm:$0xff] }
  0xd5   : > { %983 = vst.msk [vmem:[%s1893_s7 + $0x38] sm:$0xff] %vm303_vm0, %v919_v47  ;;  %v933_v59 = vmul.f32 %v2294_v39, %v549_v48  ;;  %v566_v57 = vmul.f32 %v1872_v52, %v2295_v8  ;;  %v947_v5 = vmul.f32 %v1866_v22, %v563_v16  ;;  %v556_v15 = vmul.f32 %v1872_v52, %v2296_v2  ;;  %v2309_v48 = vld [vmem:[#allocation16_spill] sm:$0xff] }
  0xd6   : > { %982 = vst.msk [vmem:[%s1893_s7 + $0x30] sm:$0xff] %vm303_vm0, %v918_v51  ;;  %v937_v20 = vmul.f32 %v2297_v41, %v553_v23  ;;  %v555_v47 = vmul.f32 %v1872_v52, %v2298_v19  ;;  %v936_v32 = vmul.f32 %v1870_v56, %v552_v6  ;;  %v2299_v51 = vld [vmem:[#allocation17_spill] sm:$0xff]  ;;  %v568_v53 = vmul.f32 %v1872_v52, %v2309_v48  ;;  %v2314_v39 = vld [vmem:[#allocation32_spill] sm:$0xff] }
  0xd7   : > { %996 = vst.msk [vmem:[%s1893_s7 + $0xa0] sm:$0xff] %vm303_vm0, %v932_v40  ;;  %v569_v58 = vmul.f32 %v1872_v52, %v2299_v51  ;;  %v950_v22 = vmul.f32 %v1874_v35, %v566_v57  ;;  %v2300_v40 = vld [vmem:[#allocation8_spill] sm:$0xff]  ;;  %v567_v16 = vmul.f32 %v1872_v52, %v2310_v9  ;;  %v570_v6 = vmul.f32 %v1872_v52, %v2313_v4  ;;  %v2315_v57 = vld [vmem:[#allocation22_spill] sm:$0xff]  ;;  %v2326_v9 = vld [vmem:[#allocation33_spill] sm:$0xff] }
  0xd8   : > { %v1973_v34 = vpop.permute.xlu2 %814  ;;  %986 = vst.msk [vmem:[%s1893_s7 + $0x50] sm:$0xff] %vm303_vm0, %v922_v36  ;;  %v559_v37 = vmul.f32 %v1872_v52, %v2300_v40  ;;  %v940_v36 = vmul.f32 %v1884_v54, %v556_v15  ;;  %v939_v13 = vmul.f32 %v1886_v61, %v555_v47  ;;  %v2304_v61 = vld [vmem:[#allocation9_spill] sm:$0xff]  ;;  %v2317_v40 = vld [vmem:[#allocation35_spill] sm:$0xff] }
  0xd9   : > { %v1980_v10 = vpop.permute.xlu1 %764  ;;  %v1982_v46 = vpop.permute.xlu0 %759  ;;  %985 = vst.msk [vmem:[%s1893_s7 + $0x48] sm:$0xff] %vm303_vm0, %v921_v50  ;;  %v558_v50 = vmul.f32 %v1872_v52, %v2301_v12  ;;  %v953_v54 = vmul.f32 %v1927_v31, %v569_v58  ;;  %v2316_v15 = vld [vmem:[#allocation21_spill] sm:$0xff] }
  0xda   : > { %999 = vst.msk [vmem:[%s1893_s7 + $0xb8] sm:$0xff] %vm303_vm0, %v935_v55  ;;  %v2302_v55 = vld [vmem:[#allocation20_spill] sm:$0xff]  ;;  %v943_v27 = vmul.f32 %v1934_v25, %v559_v37  ;;  %v573_v41 = vmul.f32 %v1872_v52, %v2316_v15  ;;  %v587_v37 = vmul.f32 %v1872_v52, %v2317_v40 }
  0xdb   : > { %989 = vst.msk [vmem:[%s1893_s7 + $0x68] sm:$0xff] %vm303_vm0, %v925_v49  ;;  %v572_v35 = vmul.f32 %v1872_v52, %v2302_v55  ;;  %v942_v63 = vmul.f32 %v1936_v29, %v558_v50  ;;  %v2319_v50 = vld [vmem:[#allocation24_spill] sm:$0xff] }
  0xdc   : > { %988 = vst.msk [vmem:[%s1893_s7 + $0x60] sm:$0xff] %vm303_vm0, %v924_v7  ;;  %v562_v7 = vmul.f32 %v1872_v52, %v2303_v1  ;;  %v2320_v1 = vld [vmem:[#allocation38_spill] sm:$0xff] }
  0xdd   : > { %1002 = vst.msk [vmem:[%s1893_s7 + $0xd0] sm:$0xff] %vm303_vm0, %v938_v42  ;;  %v561_v42 = vmul.f32 %v1872_v52, %v2304_v61  ;;  %v956_v31 = vmul.f32 %v1973_v34, %v572_v35 }
  0xde   : > { %992 = vst.msk [vmem:[%s1893_s7 + $0x80] sm:$0xff] %vm303_vm0, %v928_v18  ;;  %v2305_v18 = vld [vmem:[#allocation23_spill] sm:$0xff]  ;;  %v946_v25 = vmul.f32 %v1980_v10, %v562_v7  ;;  %v590_v7 = vmul.f32 %v1872_v52, %v2320_v1 }
  0xdf   : > { %991 = vst.msk [vmem:[%s1893_s7 + $0x78] sm:$0xff] %vm303_vm0, %v927_v33  ;;  %v575_v38 = vmul.f32 %v1872_v52, %v2305_v18  ;;  %v2306_v33 = vld [vmem:[#allocation13_spill] sm:$0xff]  ;;  %v945_v29 = vmul.f32 %v1982_v46, %v561_v42  ;;  %v2322_v42 = vld [vmem:[#allocation27_spill] sm:$0xff] }
  0xe0   : > { %v830_v14 = vpop.permute.xlu2 %829  ;;  %1005 = vst.msk [vmem:[%s1893_s7 + $0xe8] sm:$0xff] %vm303_vm0, %v941_v26  ;;  %v565_v17 = vmul.f32 %v1872_v52, %v2306_v33  ;;  %v2307_v26 = vld [vmem:[#allocation12_spill] sm:$0xff] }
  0xe1   : > { %v780_v60 = vpop.permute.xlu1 %779  ;;  %v775_v28 = vpop.permute.xlu0 %774  ;;  %995 = vst.msk [vmem:[%s1893_s7 + $0x98] sm:$0xff] %vm303_vm0, %v931_v21  ;;  %v564_v62 = vmul.f32 %v1872_v52, %v2307_v26  ;;  %v2308_v21 = vld [vmem:[#allocation26_spill] sm:$0xff]  ;;  %v959_v34 = vmul.f32 %v830_v14, %v575_v38  ;;  %v581_v14 = vmul.f32 %v1872_v52, %v2311_v44  ;;  %v2323_v26 = vld [vmem:[#allocation31_spill] sm:$0xff] }
  0xe2   : > { %994 = vst.msk [vmem:[%s1893_s7 + $0x90] sm:$0xff] %vm303_vm0, %v930_v11  ;;  %v578_v43 = vmul.f32 %v1872_v52, %v2308_v21  ;;  %v949_v11 = vmul.f32 %v780_v60, %v565_v17  ;;  %v571_v60 = vmul.f32 %v1872_v52, %v2312_v0  ;;  %v2328_v0 = vld [vmem:[#allocation36_spill] sm:$0xff] }
  0xe3   : > { %1008 = vst.msk [vmem:[%s1893_s7 + $0x100] sm:$0xff] %vm303_vm0, %v944_v30  ;;  %v948_v30 = vmul.f32 %v775_v28, %v564_v62  ;;  %v583_v62 = vmul.f32 %v1872_v52, %v2323_v26 }
  0xe4   : > { %998 = vst.msk [vmem:[%s1893_s7 + $0xb0] sm:$0xff] %vm303_vm0, %v934_v24 }
  0xe5   : > { %997 = vst.msk [vmem:[%s1893_s7 + $0xa8] sm:$0xff] %vm303_vm0, %v933_v59  ;;  %v584_v59 = vmul.f32 %v1872_v52, %v2314_v39  ;;  %v2329_v39 = vld [vmem:[#allocation39_spill] sm:$0xff] }
  0xe6   : > { %1011 = vst.msk [vmem:[%s1893_s7 + $0x118] sm:$0xff] %vm303_vm0, %v947_v5  ;;  %v574_v5 = vmul.f32 %v1872_v52, %v2315_v57 }
  0xe7   : > { %1001 = vst.msk [vmem:[%s1893_s7 + $0xc8] sm:$0xff] %vm303_vm0, %v937_v20 }
  0xe8   : > { %v845_v56 = vpop.permute.xlu2 %844  ;;  %1000 = vst.msk [vmem:[%s1893_s7 + $0xc0] sm:$0xff] %vm303_vm0, %v936_v32 }
  0xe9   : > { %v795_v3 = vpop.permute.xlu1 %794  ;;  %v790_v49 = vpop.permute.xlu0 %789  ;;  %1014 = vst.msk [vmem:[%s1893_s7 + $0x130] sm:$0xff] %vm303_vm0, %v950_v22  ;;  %v962_v23 = vmul.f32 %v845_v56, %v578_v43  ;;  %v576_v56 = vmul.f32 %v1872_v52, %v2319_v50 }
  0xea   : > { %1004 = vst.msk [vmem:[%s1893_s7 + $0xe0] sm:$0xff] %vm303_vm0, %v940_v36  ;;  %v952_v24 = vmul.f32 %v795_v3, %v568_v53  ;;  %v951_v28 = vmul.f32 %v790_v49, %v567_v16  ;;  %v2318_v36 = vld [vmem:[#allocation25_spill] sm:$0xff]  ;;  %v585_v16 = vmul.f32 %v1872_v52, %v2326_v9 }
  0xeb   : > { %1003 = vst.msk [vmem:[%s1893_s7 + $0xd8] sm:$0xff] %vm303_vm0, %v939_v13  ;;  %v577_v12 = vmul.f32 %v1872_v52, %v2318_v36 }
  0xec   : > { %1017 = vst.msk [vmem:[%s1893_s7 + $0x148] sm:$0xff] %vm303_vm0, %v953_v54 }
  0xed   : > { %1007 = vst.msk [vmem:[%s1893_s7 + $0xf8] sm:$0xff] %vm303_vm0, %v943_v27  ;;  %v2321_v27 = vld [vmem:[#allocation28_spill] sm:$0xff] }
  0xee   : > { %1006 = vst.msk [vmem:[%s1893_s7 + $0xf0] sm:$0xff] %vm303_vm0, %v942_v63  ;;  %v580_v61 = vmul.f32 %v1872_v52, %v2321_v27  ;;  %v579_v63 = vmul.f32 %v1872_v52, %v2322_v42 }
  0xef   : > { %1020 = vst.msk [vmem:[%s1893_s7 + $0x160] sm:$0xff] %vm303_vm0, %v956_v31 }
  0xf0   : > { %v860_v10 = vpop.permute.xlu2 %859  ;;  %1010 = vst.msk [vmem:[%s1893_s7 + $0x110] sm:$0xff] %vm303_vm0, %v946_v25 }
  0xf1   : > { %v810_v46 = vpop.permute.xlu1 %809  ;;  %v805_v45 = vpop.permute.xlu0 %804  ;;  %1009 = vst.msk [vmem:[%s1893_s7 + $0x108] sm:$0xff] %vm303_vm0, %v945_v29  ;;  %v965_v8 = vmul.f32 %v860_v10, %v581_v14  ;;  %v2324_v29 = vld [vmem:[#allocation30_spill] sm:$0xff]  ;;  %v2327_v14 = vld [vmem:[#allocation37_spill] sm:$0xff] }
  0xf2   : > { %1023 = vst.msk [vmem:[%s1893_s7 + $0x178] sm:$0xff] %vm303_vm0, %v959_v34  ;;  %v955_v2 = vmul.f32 %v810_v46, %v571_v60  ;;  %v954_v20 = vmul.f32 %v805_v45, %v570_v6  ;;  %v582_v21 = vmul.f32 %v1872_v52, %v2324_v29  ;;  %v2325_v10 = vld [vmem:[#allocation34_spill] sm:$0xff]  ;;  %v588_v60 = vmul.f32 %v1872_v52, %v2328_v0 }
  0xf3   : > { %1013 = vst.msk [vmem:[%s1893_s7 + $0x128] sm:$0xff] %vm303_vm0, %v949_v11  ;;  %v586_v11 = vmul.f32 %v1872_v52, %v2325_v10 }
  0xf4   : > { %1012 = vst.msk [vmem:[%s1893_s7 + $0x120] sm:$0xff] %vm303_vm0, %v948_v30 }
  0xf5   : > { %1026 = vst.msk [vmem:[%s1893_s7 + $0x190] sm:$0xff] %vm303_vm0, %v962_v23  ;;  %v589_v23 = vmul.f32 %v1872_v52, %v2327_v14 }
  0xf6   : > { %1016 = vst.msk [vmem:[%s1893_s7 + $0x140] sm:$0xff] %vm303_vm0, %v952_v24 }
  0xf7   : > { %1015 = vst.msk [vmem:[%s1893_s7 + $0x138] sm:$0xff] %vm303_vm0, %v951_v28 }
  0xf8   : > { %v875_v19 = vpop.permute.xlu2 %874  ;;  %1029 = vst.msk [vmem:[%s1893_s7 + $0x1a8] sm:$0xff] %vm303_vm0, %v965_v8 }
  0xf9   : > { %v968_v47 = vmul.f32 %v875_v19, %v584_v59  ;;  %v825_v32 = vpop.permute.xlu1 %824  ;;  %v820_v51 = vpop.permute.xlu0 %819  ;;  %1019 = vst.msk [vmem:[%s1893_s7 + $0x158] sm:$0xff] %vm303_vm0, %v955_v2  ;;  %v591_v59 = vmul.f32 %v1872_v52, %v2329_v39 }
  0xfa   : > { %v958_v58 = vmul.f32 %v825_v32, %v574_v5  ;;  %v957_v22 = vmul.f32 %v820_v51, %v573_v41  ;;  %1018 = vst.msk [vmem:[%s1893_s7 + $0x150] sm:$0xff] %vm303_vm0, %v954_v20 }
  0xfb   : > { %1032 = vst.msk [vmem:[%s1893_s7 + $0x1c0] sm:$0xff] %vm303_vm0, %v968_v47 }
  0xfc   : > { %1022 = vst.msk [vmem:[%s1893_s7 + $0x170] sm:$0xff] %vm303_vm0, %v958_v58 }
  0xfd   : > { %1021 = vst.msk [vmem:[%s1893_s7 + $0x168] sm:$0xff] %vm303_vm0, %v957_v22 }
 0x100   : > { %v890_v13 = vpop.permute.xlu2 %889 }
 0x101   : > { %v971_v55 = vmul.f32 %v890_v13, %v587_v37  ;;  %v840_v35 = vpop.permute.xlu1 %839  ;;  %v835_v3 = vpop.permute.xlu0 %834 }
 0x102   : > { %v961_v49 = vmul.f32 %v840_v35, %v577_v12  ;;  %v960_v54 = vmul.f32 %v835_v3, %v576_v56 }
 0x103   : > { %1035 = vst.msk [vmem:[%s1893_s7 + $0x1d8] sm:$0xff] %vm303_vm0, %v971_v55 }
 0x104   : > { %1025 = vst.msk [vmem:[%s1893_s7 + $0x188] sm:$0xff] %vm303_vm0, %v961_v49 }
 0x105   : > { %1024 = vst.msk [vmem:[%s1893_s7 + $0x180] sm:$0xff] %vm303_vm0, %v960_v54 }
 0x108   : > { %v905_v18 = vpop.permute.xlu2 %904 }
 0x109   : > { %v974_v38 = vmul.f32 %v905_v18, %v590_v7  ;;  %v855_v31 = vpop.permute.xlu1 %854  ;;  %v850_v33 = vpop.permute.xlu0 %849 }
 0x10a   : > { %v964_v17 = vmul.f32 %v855_v31, %v580_v61  ;;  %v963_v25 = vmul.f32 %v850_v33, %v579_v63 }
 0x10b   : > { %1038 = vst.msk [vmem:[%s1893_s7 + $0x1f0] sm:$0xff] %vm303_vm0, %v974_v38 }
 0x10c   : > { %1028 = vst.msk [vmem:[%s1893_s7 + $0x1a0] sm:$0xff] %vm303_vm0, %v964_v17 }
 0x10d   : > { %1027 = vst.msk [vmem:[%s1893_s7 + $0x198] sm:$0xff] %vm303_vm0, %v963_v25 }
 0x111   : > { %v870_v43 = vpop.permute.xlu1 %869  ;;  %v865_v34 = vpop.permute.xlu0 %864 }
 0x112   : > { %v967_v48 = vmul.f32 %v870_v43, %v583_v62  ;;  %v966_v53 = vmul.f32 %v865_v34, %v582_v21 }
 0x114   : > { %1031 = vst.msk [vmem:[%s1893_s7 + $0x1b8] sm:$0xff] %vm303_vm0, %v967_v48 }
 0x115   : > { %1030 = vst.msk [vmem:[%s1893_s7 + $0x1b0] sm:$0xff] %vm303_vm0, %v966_v53 }
 0x119   : > { %v885_v46 = vpop.permute.xlu1 %884  ;;  %v880_v45 = vpop.permute.xlu0 %879 }
 0x11a   : > { %v970_v30 = vmul.f32 %v885_v46, %v586_v11  ;;  %v969_v44 = vmul.f32 %v880_v45, %v585_v16 }
 0x11c   : > { %1034 = vst.msk [vmem:[%s1893_s7 + $0x1d0] sm:$0xff] %vm303_vm0, %v970_v30 }
 0x11d   : > { %1033 = vst.msk [vmem:[%s1893_s7 + $0x1c8] sm:$0xff] %vm303_vm0, %v969_v44 }
 0x121   : > { %v900_v24 = vpop.permute.xlu1 %899  ;;  %v895_v4 = vpop.permute.xlu0 %894 }
 0x122   : > { %v973_v6 = vmul.f32 %v900_v24, %v589_v23  ;;  %v972_v28 = vmul.f32 %v895_v4, %v588_v60 }
 0x124   : > { %1037 = vst.msk [vmem:[%s1893_s7 + $0x1e8] sm:$0xff] %vm303_vm0, %v973_v6 }
 0x125   : > { %1036 = vst.msk [vmem:[%s1893_s7 + $0x1e0] sm:$0xff] %vm303_vm0, %v972_v28 }
 0x129   : > { %v910_v8 = vpop.permute.xlu0 %909 }
 0x12a   : > { %v975_v57 = vmul.f32 %v910_v8, %v591_v59 }
 0x12c   : > { %1039 = vst.msk [vmem:[%s1893_s7 + $0x1f8] sm:$0xff] %vm303_vm0, %v975_v57 }
 0x12d PF: > { %s12_s11 = sadd.s32 1, %s1190_s11   ;;  %s2330_s9 = smov %s1186_s10 }
 0x12e   : > { %p9_p5 = scmp.ge.s32.totalorder %s12_s11, 4   ;;  %s2331_s10 = smov %s2333_s12 }
 0x130   :  { %11 = sbr.rel (!%p9_p5) target bundleno = 2 (0x2), region = 58 }

</bundles_post_ra>
